<compile_context>
chip_gen: v7x
topology: tpu7x:2x2x1
jax: 0.10.0
libtpu: 0.0.40
codegen_flags: <defaults>
</compile_context>

<pallas_src>
import functools

import jax
import jax.numpy as jnp
from jax.experimental import pallas as pl
from jax.experimental.pallas import tpu as pltpu


# --------------------------------------------------------------------------- #
# Kernel
# --------------------------------------------------------------------------- #
def _attention_block_kernel(
    g_ref,     # [F_l,   tile_n]   io dtype
    x_ref,     # [F_g,   tile_n]   io dtype
    wg_ref,    # [F_int, F_l]      io dtype (BN folded)
    wx_ref,    # [F_int, F_g]      io dtype (BN folded)
    bgx_ref,   # [F_int, 1]        f32      (BN-folded b_g + b_x, fused)
    wp_ref,    # [F_int, 1] or [1, F_int]   f32 (BN folded psi weight)
    bp_ref,    # [1, 1]            f32
    out_ref,   # [F_g,   tile_n]   io dtype
    *,
    psi_via_mxu: bool,
):
    x_in = x_ref[...]

    # Fused conv+BN branches: [Cout, Cin] @ [Cin, tile_n] on the MXU, f32 acc,
    # single fused bias add (b_g + b_x folded in the wrapper).
    # TODO(synk): optionally concat Wg|Wx into [F_int, F_l+F_g] with g/x staged
    # into one contiguous VMEM block to double MXU contraction depth per pass.
    p = jnp.dot(wg_ref[...], g_ref[...], preferred_element_type=jnp.float32)
    p = p + jnp.dot(wx_ref[...], x_in, preferred_element_type=jnp.float32)
    p = jnp.maximum(p + bgx_ref[...], 0.0)

    # psi: F_int -> 1 conv.
    if psi_via_mxu:
        # Large F_int: put the contraction on the (otherwise idle) MXU.
        psi = jnp.dot(wp_ref[...], p, preferred_element_type=jnp.float32)
        psi = psi + bp_ref[...]
    else:
        # Small F_int: VALU multiply + sublane (XLU) reduction is cheaper than
        # a 1-row matmul.
        psi = jnp.sum(p * wp_ref[...], axis=0, keepdims=True) + bp_ref[...]

    # Sigmoid: exp and the approximate reciprocal both live on the EUP slot
    # (no full-precision VALU divide sequence).
    psi = pl.reciprocal(1.0 + jnp.exp(-psi), approx=True)

    # out = x * psi + x == x * (psi + 1); widen x for the elementwise multiply
    # (v5e VPU has no native bf16), cast only on the store.
    out_ref[...] = (x_in.astype(jnp.float32) * (psi + 1.0)).astype(out_ref.dtype)


# --------------------------------------------------------------------------- #
# Wrapper
# --------------------------------------------------------------------------- #
def _round_up(a, m):
    return ((a + m - 1) // m) * m


def attention_block_pallas(g, x, folded, *, tile_n=4096, io_dtype=None):
    """g: [B, F_l, H, W], x: [B, F_g, H, W] (NCHW) -> out [B, F_g, H, W]."""
    B, F_l, H, W = g.shape
    _, F_g, _, _ = x.shape
    F_int = folded["wg"].shape[0]
    HW = H * W

    if io_dtype is None:
        io_dtype = x.dtype
    io_bytes = jnp.dtype(io_dtype).itemsize

    # Free reshapes (NCHW is already [B, C, HW] contiguous) -- no transposes.
    # HBM-facing tensors are cast to io_dtype (bf16 halves bytes moved).
    g3 = g.reshape(B, F_l, HW).astype(io_dtype)
    x3 = x.reshape(B, F_g, HW).astype(io_dtype)

    # Lane-dense spatial tile: multiple of 128, clamped to the (128-padded) image.
    tile_n = max(128, (min(tile_n, _round_up(HW, 128)) // 128) * 128)

    # Per-generation VMEM budget, derived from actual per-step need.
    def vmem_need(tn):
        blocks = 2 * (F_l + 2 * F_g) * tn * io_bytes      # double-buffered g/x/out
        interm = (3 * F_int + 2) * tn * 4                 # p + matmul temps + psi (f32)
        weights = (F_int * (F_l + F_g) + 2 * F_int + 2) * 4
        return blocks + interm + weights

    try:
        vmem_cap = getattr(pltpu.get_tpu_info(), "vmem_capacity_bytes",
                           64 * 1024 * 1024)
    except Exception:  # pragma: no cover - conservative fallback (v7x per-TC)
        vmem_cap = 64 * 1024 * 1024
    budget = int(0.6 * vmem_cap)                          # headroom for Mosaic scratch
    while vmem_need(tile_n) > budget and tile_n > 128:
        tile_n = max(128, (tile_n // 2 // 128) * 128)

    # Pad HW up to a multiple of tile_n (tail dropped after the call) instead
    # of shrinking tile_n to a divisor of HW: keeps every store unmasked.
    HW_pad = _round_up(HW, tile_n)
    n_tiles = HW_pad // tile_n

    # Keep >= 2 grid programs so both v7x TensorCores get work (no-op on v5e/v6e).
    if B * n_tiles < 2 and tile_n >= 256:
        tile_n = max(128, (tile_n // 2 // 128) * 128)
        HW_pad = _round_up(HW, tile_n)
        n_tiles = HW_pad // tile_n

    if HW_pad != HW:
        pad = ((0, 0), (0, 0), (0, HW_pad - HW))
        g3 = jnp.pad(g3, pad)
        x3 = jnp.pad(x3, pad)

    vmem_limit = int(min(max(2 * vmem_need(tile_n), 32 * 1024 * 1024), budget))

    # psi contraction: MXU for large F_int, sublane reduction otherwise.
    psi_via_mxu = F_int >= 128
    wp = folded["wp"].reshape(1, F_int) if psi_via_mxu else folded["wp"].reshape(F_int, 1)

    data = lambda b, j: (b, 0, j)                         # batch-squeezed spatial tiles
    full = lambda shape: pl.BlockSpec(shape, lambda b, j: (0, 0))  # resident weights

    kernel = functools.partial(_attention_block_kernel, psi_via_mxu=psi_via_mxu)

    out = pl.pallas_call(
        kernel,
        out_shape=jax.ShapeDtypeStruct((B, F_g, HW_pad), io_dtype),
        grid_spec=pltpu.PrefetchScalarGridSpec(
            num_scalar_prefetch=0,
            grid=(B, n_tiles),
            in_specs=[
                pl.BlockSpec((None, F_l, tile_n), data),   # g (batch squeezed)
                pl.BlockSpec((None, F_g, tile_n), data),   # x (batch squeezed)
                full((F_int, F_l)),                        # folded W_g
                full((F_int, F_g)),                        # folded W_x
                full((F_int, 1)),                          # fused folded b_g + b_x
                full(wp.shape),                            # folded W_psi
                full((1, 1)),                              # folded b_psi
            ],
            out_specs=pl.BlockSpec((None, F_g, tile_n), data),
        ),
        compiler_params=pltpu.CompilerParams(
            dimension_semantics=("parallel", "parallel"),
            vmem_limit_bytes=vmem_limit,
        ),
    )(
        g3, x3,
        folded["wg"].astype(io_dtype),
        folded["wx"].astype(io_dtype),
        folded["bgx"].astype(jnp.float32),
        wp.astype(jnp.float32),
        folded["bp"].astype(jnp.float32),
    )

    out = out[..., :HW]                                    # drop the padded tail
    return out.reshape(B, F_g, H, W)


# --------------------------------------------------------------------------- #
# Parameter construction + BN folding
# --------------------------------------------------------------------------- #
def make_params(key, F_g, F_l, F_int, dtype=jnp.float32):
    """Raw module-style parameters (PyTorch shapes, 1x1 conv weight as [Cout, Cin])."""
    ks = jax.random.split(key, 9)

    def conv(k, cout, cin):
        return jax.random.normal(k, (cout, cin), dtype) * 0.1

    def bn(k, c):
        k1, k2, k3, k4 = jax.random.split(k, 4)
        return dict(
            gamma=1.0 + 0.1 * jax.random.normal(k1, (c,), dtype),
            beta=0.1 * jax.random.normal(k2, (c,), dtype),
            mean=0.05 * jax.random.normal(k3, (c,), dtype),
            var=jnp.abs(1.0 + 0.1 * jax.random.normal(k4, (c,), dtype)),
        )

    return dict(
        wg=conv(ks[0], F_int, F_l), bg=0.1 * jax.random.normal(ks[1], (F_int,), dtype),
        bng=bn(ks[2], F_int),
        wx=conv(ks[3], F_int, F_g), bx=0.1 * jax.random.normal(ks[4], (F_int,), dtype),
        bnx=bn(ks[5], F_int),
        wp=conv(ks[6], 1, F_int), bp=0.1 * jax.random.normal(ks[7], (1,), dtype),
        bnp=bn(ks[8], 1),
    )


def _fold_bn_into_conv(w, b, bn, eps=1e-5):
    """y = scale*(W@x + b) + shift  ->  (scale*W) @ x + (scale*b + shift)."""
    scale = bn["gamma"] / jnp.sqrt(bn["var"] + eps)
    shift = bn["beta"] - scale * bn["mean"]
    w_f = w * scale[:, None]                 # row (out-channel) scale
    b_f = (b * scale + shift)[:, None]       # [Cout, 1] column bias
    return w_f, b_f


def fold_attention_params(p, eps=1e-5):
    wg, bg = _fold_bn_into_conv(p["wg"], p["bg"], p["bng"], eps)
    wx, bx = _fold_bn_into_conv(p["wx"], p["bx"], p["bnx"], eps)
    wp, bp = _fold_bn_into_conv(p["wp"], p["bp"], p["bnp"], eps)
    return dict(
        wg=wg,                               # [F_int, F_l]
        wx=wx,                               # [F_int, F_g]
        bgx=bg + bx,                         # [F_int, 1] fused bias
        wp=jnp.transpose(wp),                # [F_int, 1]
        bp=bp,                               # [1, 1]
    )


# --------------------------------------------------------------------------- #
# Pure-JAX reference (un-folded module math, for correctness check)
# --------------------------------------------------------------------------- #
def attention_block_ref(g, x, p, eps=1e-5):
    def conv_bn(inp, w, b, bn):
        y = jnp.einsum("oc,bchw->bohw", w, inp) + b[None, :, None, None]
        scale = bn["gamma"] / jnp.sqrt(bn["var"] + eps)
        shift = bn["beta"] - scale * bn["mean"]
        return y * scale[None, :, None, None] + shift[None, :, None, None]

    g1 = conv_bn(g, p["wg"], p["bg"], p["bng"])
    x1 = conv_bn(x, p["wx"], p["bx"], p["bnx"])
    r = jnp.maximum(g1 + x1, 0.0)
    psi = jax.nn.sigmoid(conv_bn(r, p["wp"], p["bp"], p["bnp"]))
    return x * psi + x


# --------------------------------------------------------------------------- #
if __name__ == "__main__":
    key = jax.random.PRNGKey(0)
    k_g, k_x, k_p = jax.random.split(key, 3)

    # --- Test 1: small channels, 128-friendly spatial, f32 I/O --------------
    B, H, W = 2, 16, 16
    F_g, F_l, F_int = 4, 4, 8            # x has F_g channels, g has F_l channels

    g = jax.random.normal(k_g, (B, F_l, H, W), jnp.float32)
    x = jax.random.normal(k_x, (B, F_g, H, W), jnp.float32)
    params = make_params(k_p, F_g, F_l, F_int)
    folded = fold_attention_params(params)
    ref = attention_block_ref(g, x, params)

    out = jax.block_until_ready(attention_block_pallas(g, x, folded))
    assert out.shape == x.shape
    # Tolerance accounts for the approximate EUP reciprocal in the sigmoid.
    assert jnp.allclose(out, ref, atol=5e-3, rtol=5e-3), (
        float(jnp.max(jnp.abs(out - ref))))

    # --- Test 2: bf16 HBM-facing path (halves bytes moved) ------------------
    out_bf16 = jax.block_until_ready(
        attention_block_pallas(g, x, folded, io_dtype=jnp.bfloat16))
    assert out_bf16.shape == x.shape
    assert jnp.allclose(out_bf16.astype(jnp.float32), ref, atol=5e-2, rtol=5e-2), (
        float(jnp.max(jnp.abs(out_bf16.astype(jnp.float32) - ref))))

    # --- Test 3: non-128-multiple HW (pad/drop path) + large F_int (MXU psi) -
    H2, W2 = 14, 14
    F_g2, F_l2, F_int2 = 8, 8, 128
    g2 = jax.random.normal(k_g, (1, F_l2, H2, W2), jnp.float32)
    x2 = jax.random.normal(k_x, (1, F_g2, H2, W2), jnp.float32)
    params2 = make_params(k_p, F_g2, F_l2, F_int2)
    folded2 = fold_attention_params(params2)
    out2 = jax.block_until_ready(attention_block_pallas(g2, x2, folded2))
    ref2 = attention_block_ref(g2, x2, params2)
    assert out2.shape == x2.shape
    assert jnp.allclose(out2, ref2, atol=5e-3, rtol=5e-3), (
        float(jnp.max(jnp.abs(out2 - ref2))))

    print("KERNEL_OK")
</pallas_src>

<mosaic_0001>
module attributes {stable_mosaic.version = 11 : i64} {
  func.func @_attention_block_kernel(%arg0: i32, %arg1: i32, %arg2: memref<1x4x256xf32, #tpu.memory_space<vmem>>, %arg3: memref<1x4x256xf32, #tpu.memory_space<vmem>>, %arg4: memref<8x4xf32, #tpu.memory_space<vmem>>, %arg5: memref<8x4xf32, #tpu.memory_space<vmem>>, %arg6: memref<8x1xf32, #tpu.memory_space<vmem>>, %arg7: memref<8x1xf32, #tpu.memory_space<vmem>>, %arg8: memref<1x1xf32, #tpu.memory_space<vmem>>, %arg9: memref<1x4x256xf32, #tpu.memory_space<vmem>>) attributes {dimension_semantics = [#tpu.dimension_semantics<parallel>, #tpu.dimension_semantics<parallel>], iteration_bounds = array<i64: 2, 1>, scalar_prefetch = 0 : i64, scratch_operands = 0 : i64, tpu.core_type = #tpu.core_type<tc>, window_params = [{transform_indices = @transform_0, window_bounds = array<i64: 1, 4, 256>}, {transform_indices = @transform_1, window_bounds = array<i64: 1, 4, 256>}, {pipeline_mode = #tpu.pipeline_mode<synchronous>, transform_indices = @transform_2, window_bounds = array<i64: 8, 4>}, {pipeline_mode = #tpu.pipeline_mode<synchronous>, transform_indices = @transform_3, window_bounds = array<i64: 8, 4>}, {pipeline_mode = #tpu.pipeline_mode<synchronous>, transform_indices = @transform_4, window_bounds = array<i64: 8, 1>}, {pipeline_mode = #tpu.pipeline_mode<synchronous>, transform_indices = @transform_5, window_bounds = array<i64: 8, 1>}, {pipeline_mode = #tpu.pipeline_mode<synchronous>, transform_indices = @transform_6, window_bounds = array<i64: 1, 1>}, {transform_indices = @transform_7, window_bounds = array<i64: 1, 4, 256>}]} {
    %c0 = arith.constant 0 : index
    %c0_0 = arith.constant 0 : index
    %c0_1 = arith.constant 0 : index
    %0 = vector.load %arg3[%c0, %c0_0, %c0_1] : memref<1x4x256xf32, #tpu.memory_space<vmem>>, vector<1x4x256xf32>
    %1 = vector.shape_cast %0 : vector<1x4x256xf32> to vector<4x256xf32>
    %c0_2 = arith.constant 0 : index
    %c0_3 = arith.constant 0 : index
    %2 = vector.load %arg4[%c0_2, %c0_3] : memref<8x4xf32, #tpu.memory_space<vmem>>, vector<8x4xf32>
    %c0_4 = arith.constant 0 : index
    %c0_5 = arith.constant 0 : index
    %c0_6 = arith.constant 0 : index
    %3 = vector.load %arg2[%c0_4, %c0_5, %c0_6] : memref<1x4x256xf32, #tpu.memory_space<vmem>>, vector<1x4x256xf32>
    %4 = vector.shape_cast %3 : vector<1x4x256xf32> to vector<4x256xf32>
    %cst = arith.constant dense<0.000000e+00> : vector<8x256xf32>
    %5 = tpu.matmul %2, %4, %cst {dimension_numbers = #tpu.dot_dimension_numbers<[1], [0], [0], [1], [0, 0, 1, 1], [], []>} : vector<8x4xf32>, vector<4x256xf32>, vector<8x256xf32> -> vector<8x256xf32>
    %c0_7 = arith.constant 0 : index
    %c0_8 = arith.constant 0 : index
    %6 = vector.load %arg5[%c0_7, %c0_8] : memref<8x4xf32, #tpu.memory_space<vmem>>, vector<8x4xf32>
    %cst_9 = arith.constant dense<0.000000e+00> : vector<8x256xf32>
    %7 = tpu.matmul %6, %1, %cst_9 {dimension_numbers = #tpu.dot_dimension_numbers<[1], [0], [0], [1], [0, 0, 1, 1], [], []>} : vector<8x4xf32>, vector<4x256xf32>, vector<8x256xf32> -> vector<8x256xf32>
    %8 = arith.addf %5, %7 : vector<8x256xf32>
    %c0_10 = arith.constant 0 : index
    %c0_11 = arith.constant 0 : index
    %9 = vector.load %arg6[%c0_10, %c0_11] : memref<8x1xf32, #tpu.memory_space<vmem>>, vector<8x1xf32>
    %10 = vector.broadcast %9 : vector<8x1xf32> to vector<8x256xf32>
    %11 = arith.addf %8, %10 : vector<8x256xf32>
    %cst_12 = arith.constant 0.000000e+00 : f32
    %12 = vector.broadcast %cst_12 : f32 to vector<8x256xf32>
    %13 = arith.maximumf %11, %12 : vector<8x256xf32>
    %c0_13 = arith.constant 0 : index
    %c0_14 = arith.constant 0 : index
    %14 = vector.load %arg7[%c0_13, %c0_14] : memref<8x1xf32, #tpu.memory_space<vmem>>, vector<8x1xf32>
    %15 = vector.broadcast %14 : vector<8x1xf32> to vector<8x256xf32>
    %16 = arith.mulf %13, %15 : vector<8x256xf32>
    %cst_15 = arith.constant dense<0.000000e+00> : vector<256xf32>
    %17 = vector.multi_reduction <add>, %16, %cst_15 [0] : vector<8x256xf32> to vector<256xf32>
    %18 = vector.shape_cast %17 : vector<256xf32> to vector<1x256xf32>
    %c0_16 = arith.constant 0 : index
    %c0_17 = arith.constant 0 : index
    %19 = vector.load %arg8[%c0_16, %c0_17] : memref<1x1xf32, #tpu.memory_space<vmem>>, vector<1x1xf32>
    %20 = vector.broadcast %19 : vector<1x1xf32> to vector<1x256xf32>
    %21 = arith.addf %18, %20 : vector<1x256xf32>
    %cst_18 = arith.constant 0.000000e+00 : f32
    %22 = vector.broadcast %cst_18 : f32 to vector<1x256xf32>
    %23 = arith.subf %22, %21 : vector<1x256xf32>
    %24 = math.exp %23 : vector<1x256xf32>
    %cst_19 = arith.constant 1.000000e+00 : f32
    %25 = vector.broadcast %cst_19 : f32 to vector<1x256xf32>
    %26 = arith.addf %25, %24 : vector<1x256xf32>
    %27 = tpu.reciprocal %26 {approx = true} : vector<1x256xf32> -> vector<1x256xf32>
    %cst_20 = arith.constant 1.000000e+00 : f32
    %28 = vector.broadcast %cst_20 : f32 to vector<1x256xf32>
    %29 = arith.addf %27, %28 : vector<1x256xf32>
    %30 = vector.broadcast %29 : vector<1x256xf32> to vector<4x256xf32>
    %31 = arith.mulf %1, %30 : vector<4x256xf32>
    %c0_21 = arith.constant 0 : index
    %c0_22 = arith.constant 0 : index
    %c0_23 = arith.constant 0 : index
    %32 = vector.load %arg9[%c0_21, %c0_22, %c0_23] : memref<1x4x256xf32, #tpu.memory_space<vmem>>, vector<1x4x256xf32>
    %33 = vector.shape_cast %32 : vector<1x4x256xf32> to vector<4x256xf32>
    %34 = vector.shape_cast %31 : vector<4x256xf32> to vector<1x4x256xf32>
    tpu.vector_store %arg9[%c0_21, %c0_22, %c0_23], %34 {strides = array<i32>} : memref<1x4x256xf32, #tpu.memory_space<vmem>>, vector<1x4x256xf32>,
    return
  }
  func.func @transform_0(%arg0: i32, %arg1: i32) -> (i32, i32, i32) {
    %c0_i32 = arith.constant 0 : i32
    %c0_i32_0 = arith.constant 0 : i32
    return %arg0, %c0_i32, %arg1 : i32, i32, i32
  }
  func.func @transform_1(%arg0: i32, %arg1: i32) -> (i32, i32, i32) {
    %c0_i32 = arith.constant 0 : i32
    %c0_i32_0 = arith.constant 0 : i32
    return %arg0, %c0_i32, %arg1 : i32, i32, i32
  }
  func.func @transform_2(%arg0: i32, %arg1: i32) -> (i32, i32) {
    %c0_i32 = arith.constant 0 : i32
    %c0_i32_0 = arith.constant 0 : i32
    %c0_i32_1 = arith.constant 0 : i32
    return %c0_i32, %c0_i32_0 : i32, i32
  }
  func.func @transform_3(%arg0: i32, %arg1: i32) -> (i32, i32) {
    %c0_i32 = arith.constant 0 : i32
    %c0_i32_0 = arith.constant 0 : i32
    %c0_i32_1 = arith.constant 0 : i32
    return %c0_i32, %c0_i32_0 : i32, i32
  }
  func.func @transform_4(%arg0: i32, %arg1: i32) -> (i32, i32) {
    %c0_i32 = arith.constant 0 : i32
    %c0_i32_0 = arith.constant 0 : i32
    %c0_i32_1 = arith.constant 0 : i32
    return %c0_i32, %c0_i32_0 : i32, i32
  }
  func.func @transform_5(%arg0: i32, %arg1: i32) -> (i32, i32) {
    %c0_i32 = arith.constant 0 : i32
    %c0_i32_0 = arith.constant 0 : i32
    %c0_i32_1 = arith.constant 0 : i32
    return %c0_i32, %c0_i32_0 : i32, i32
  }
  func.func @transform_6(%arg0: i32, %arg1: i32) -> (i32, i32) {
    %c0_i32 = arith.constant 0 : i32
    %c0_i32_0 = arith.constant 0 : i32
    %c0_i32_1 = arith.constant 0 : i32
    return %c0_i32, %c0_i32_0 : i32, i32
  }
  func.func @transform_7(%arg0: i32, %arg1: i32) -> (i32, i32, i32) {
    %c0_i32 = arith.constant 0 : i32
    %c0_i32_0 = arith.constant 0 : i32
    return %arg0, %c0_i32, %arg1 : i32, i32, i32
  }
}

</mosaic_0001>

<bundles_post_ra>
// kernel: tpu_custom_call.1
= control target key start
LH: loop header
LB: loop body
LE: loop exit
PB: predicated region body
PF: predicated region fallthrough
CT: control target
= control target key end

     0   :  { %s1037_s0 = inlined_call_operand.vmem [shape: f32[2,4,256], index: 0, kind: input, shape index: {}]   ;;  %s1038_s1 = inlined_call_operand.vmem [shape: f32[2,4,256], index: 1, kind: input, shape index: {}]   ;;  %s1039_s2 = inlined_call_operand.vmem [shape: f32[8,4], index: 2, kind: input, shape index: {}]   ;;  %s1040_s3 = inlined_call_operand.vmem [shape: f32[8,4], index: 3, kind: input, shape index: {}]   ;;  %s1041_s4 = inlined_call_operand.vmem [shape: f32[8,1], index: 4, kind: input, shape index: {}]   ;;  %s1042_s5 = inlined_call_operand.vmem [shape: f32[8,1], index: 5, kind: input, shape index: {}]   ;;  %s1043_s6 = inlined_call_operand.<no memory space> [shape: f32[1,1], index: 6, kind: input, shape index: {}]   ;;  %s1044_s7 = inlined_call_operand.hbm [shape: f32[2,4,256], index: 7, kind: output, shape index: {}]  }
   0x1   :  { %v12_v0 = vstv %s1043_s6 }
   0x2   :  { %13 = vst [vmem:[#allocation2] sm:$0x1] %v12_v0 }
   0x3   :  { %14 = vsyncpa [#allocation4], 0 }
   0x4   :  { %16 = vsyncpa [#allocation4 + $0x1], 0  ;;  %s904_s26 = smov 0   ;;  %s906_s27 = smov 0  }
   0x5   :  { %s908_s28 = smov 0   ;;  %s910_s29 = smov 0  }
   0x6   :  { %s912_s30 = smov 0   ;;  %s914_s8 = smov 0  }
   0x7 LB: > { %s683_s6 = sadd.s32 4294967295, %s856_s8   ;;  %s684_s9 = sadd.s32 4294967294, %s856_s8   ;;  %s856_s8 = sphi %s914_s8, %s22_s8   ;;  %s852_s30 = sphi %s912_s30, %s1051_s30   ;;  %s848_s29 = sphi %s910_s29, %s1050_s29   ;;  %s844_s28 = sphi %s908_s28, %s1049_s28   ;;  %s840_s27 = sphi %s906_s27, %s1048_s27   ;;  %s836_s26 = sphi %s904_s26, %s1047_s26  }
   0x8   : > { %s34_s10 = sadd.s32 1, %s852_s30  ;;  %s204_s11 = sadd.s32 1, %s844_s28 }
   0x9   : > { %p36_p0 = scmp.ge.s32.totalorder %s34_s10, 2  ;;  %p214_p1 = scmp.ne.s32.totalorder %s844_s28, %s840_s27 }
   0xa   : > { %p215_p2 = scmp.eq.s32.totalorder %s683_s6, 1  ;;  %p220_p3 = scmp.ne.s32.totalorder %s840_s27, %s836_s26 }
   0xb   : > { %s1053_s10 = smov (%p36_p0, %s34_s10), 0  ;;  %p221_p5 = scmp.eq.s32.totalorder %s684_s9, 1 }
   0xc   : > { %p944_p4 = por %p215_p2, %p214_p1  ;;  %s199_s13 = ssub.s32 %s852_s30, %s1053_s10 }
   0xd   : > { %p687_p6 = scmp.ge.s32.totalorder %s856_s8, 1  ;;  %p202_p7 = scmp.eq.s32.totalorder %s199_s13, 0 }
   0xe   : > { %p951_p8 = por %p221_p5, %p220_p3  ;;  %p280_p9 = scmp.lt.s32.totalorder %s856_s8, 3 }
   0xf   : > { %s957_s15 = scalar_select %p202_p7, %s844_s28, %s204_s11  }
  0x10   : > { %p281_p10 = pnand %p687_p6, %p280_p9 }
  0x11   : > { %p326_p11 = scmp.lt.s32.totalorder (!%p281_p10), %s848_s29, 1  ;;  %v858_v1 = vmov (!%p281_p10), 0.0   ;;  %v512_v2 = vld [vmem:[%s1041_s4] sm:$0xff] (!%p281_p10)  ;;  %v859_v4 = vmov (!%p281_p10), 0   ;;  %vm356_vm0 = vcmask (!%p281_p10), 1043456   ;;  %vm352_vm1 = vcmask (!%p281_p10), 31744  }
  0x12   : > { %284 = sbr.rel (%p281_p10) target bundleno = 318 (0x13e), region = 48  ;;  %425 = vmatprep.mubr.f32.mxu1 (!%p281_p10), %v858_v1  ;;  %505 = vmatprep.mubr.f32.mxu0 (!%p281_p10), %v858_v1  ;;  %v542_v3 = vld [vmem:[#allocation2] sm:$0x1] (!%p281_p10)  ;;  %v548_v22 = vlaneseq (!%p281_p10)  ;;  %s706_s20 = sshll.u32 (!%p281_p10), %s848_s29, 7 }
  0x13   : > { %766 = vset.pattern.permute.xlu0 (!%p281_p10), %v859_v4  ;;  %767 = vset.pattern.permute.xlu1 (!%p281_p10), %v859_v4  ;;  %v522_v5 = vld [vmem:[%s1042_s5] sm:$0xff] (!%p281_p10)  ;;  %s990_s25 = scalar_lea.hbm (!%p281_p10), %s1044_s7, %s706_s20 }
  0x14   : > { %515 = vperm.xlu0 (!%p281_p10), %766, %v512_v2   ;;  %545 = vperm.xlu1 (!%p281_p10), %767, %v542_v3   ;;  %v349_v10 = vld [vmem:[%s1040_s3] sm:$0xff] (!%p281_p10)  ;;  %v549_v28 = vshrl.u32 (!%p281_p10), %v548_v22, 7 }
  0x15   : > { %v347_v11 = vld [vmem:[%s1039_s2] sm:$0xff] (!%p281_p10) }
  0x16   : > { %v550_v33 = vsub.s32 (!%p281_p10), 0, %v549_v28 }
  0x18   : > { %525 = vperm.xlu0 (!%p281_p10), %766, %v522_v5  }
  0x19   : > { %s327_s18 = scalar_select %p326_p11, %s848_s29, 1 }
  0x1a   : > { %s860_s29 = smov [#allocation3]  }
  0x1b   : > { %s704_s19 = sshll.u32 %s327_s18, 3  ;;  %s322_s18 = sand.u32 1, %s840_s27  }
  0x1c   : > { %s343_s24 = scalar_lea.vmem %s1038_s1, %s704_s19  ;;  %s333_s9 = scalar_lea.vmem %s1037_s0, %s704_s19 }
  0x1d   : > { %v973_v6 = vld [vmem:[%s343_s24] sm:$0xff]  ;;  %s688_s19 = sshll.u32 %s322_s18, 3  ;;  %s573_s6 = scalar_lea.sflag [#allocation4], %s322_s18 }
  0x1e   : > { %v348_v7 = vld [vmem:[%s333_s9] sm:$0xff]  ;;  %v351_v8 = vcombine.high %v973_v6, %v973_v6  ;;  %s324_s21 = scalar_lea.vmem [#allocation3], %s688_s19  ;;  %s782_s11 = sshll.u32 %s860_s29, 4  ;;  %s783_s11 = int_to_ptr.vmem [resolvable:$false] %s782_s11 }
  0x1f   : > { %v433_v9 = vcombine.high %v348_v7, %v348_v7  ;;  %s589_s22 = sshll.u32 %s324_s21, 4  ;;  %s784_s13 = scalar_lea.vmem %s783_s11, 256  ;;  %s992_s22 = int_to_ptr.vmem [resolvable:$true] %s589_s22 }
  0x20   : > { %693 = vmatprep.subr.msk.mxu1 %vm356_vm0, %v351_v8  ;;  %s778_s9 = scalar_lea.vmem %s992_s22, 128  ;;  %p785_p1 = scmp.lt.s32.totalorder %s992_s22, %s783_s11 }
  0x21   : > { %696 = vmatprep.subr.msk.mxu0 %vm356_vm0, %v433_v9  ;;  %694 = vmatpush1.msk.msra.mxu1 %vm356_vm0, %v973_v6  ;;  %p779_p12 = scmp.ne.s32.totalorder %s992_s22, %s778_s9  ;;  %p786_p2 = scmp.lt.s32.totalorder %s784_s13, %s778_s9 }
  0x22   : > { %697 = vmatpush1.msk.msra.mxu0 %vm356_vm0, %v348_v7  ;;  %695 = vmatmul.mubr.msk.f32.vlgmr.msra.gmra.mrb[0].mxu1 %vm352_vm1, %v349_v10 }
  0x23   : > { %698 = vmatmul.mubr.msk.f32.vlgmr.msra.gmra.mrb[0].mxu0 %vm352_vm1, %v347_v11  ;;  %p780_p13 = pnand %p779_p12, %p944_p4  ;;  %p787_p3 = por %p786_p2, %p785_p1 }
  0x25   : > { %p781_p0 = pneg %p780_p13 }
  0x27   : > { %p788_p5 = pnand %p787_p3, %p781_p0 }
  0x93   : > { %v516_v12 = vpop.permute.xlu0 %515  ;;  %v546_v35 = vpop.permute.xlu1 %545 }
  0x94   : > { %v551_v39 = vrot.slane %v546_v35, %v550_v33 }
  0x97   : > { %v526_v23 = vpop.permute.xlu0 %525 }
  0xf5   : > { %v427_v13 = vpop.f32.mrb[0].mxu1 }
  0xf6   : > { %v507_v14 = vpop.f32.mrb[0].mxu0  ;;  %v429_v16 = vpop.f32.mrb[1].mxu1 }
  0xf7   : > { %v508_v15 = vadd.f32 %v507_v14, %v427_v13  ;;  %v509_v17 = vpop.f32.mrb[1].mxu0 }
  0xf8   : > { %v510_v18 = vadd.f32 %v509_v17, %v429_v16 }
  0xf9   : > { %v518_v19 = vadd.f32 %v516_v12, %v508_v15 }
  0xfa   : > { %v519_v20 = vadd.f32 %v516_v12, %v510_v18 }
  0xfb   : > { %v520_v21 = vmax.f32 %v518_v19, 0.0 }
  0xfc   : > { %v521_v24 = vmax.f32 %v519_v20, 0.0 }
  0xfd   : > { %v528_v25 = vmul.f32 %v526_v23, %v520_v21 }
  0xfe   : > { %v529_v26 = vmul.f32 %v526_v23, %v521_v24 }
  0xff   : > { %v530_v27 = vrot.slane %v528_v25, 4 }
 0x100   : > { %v536_v29 = vrot.slane %v529_v26, 4 }
 0x101   : > { %v531_v30 = vadd.f32 %v530_v27, %v528_v25 }
 0x102   : > { %v537_v31 = vadd.f32 %v536_v29, %v529_v26 }
 0x103   : > { %v532_v32 = vrot.slane %v531_v30, 2 }
 0x104   : > { %v538_v34 = vrot.slane %v537_v31, 2 }
 0x105   : > { %v533_v36 = vadd.f32 %v532_v32, %v531_v30 }
 0x106   : > { %v539_v37 = vadd.f32 %v538_v34, %v537_v31 }
 0x107   : > { %v534_v38 = vrot.slane %v533_v36, 1 }
 0x108   : > { %v540_v40 = vrot.slane %v539_v37, 1 }
 0x109   : > { %v535_v41 = vadd.f32 %v534_v38, %v533_v36 }
 0x10a   : > { %v541_v42 = vadd.f32 %v540_v40, %v539_v37 }
 0x10b   : > { %v552_v43 = vadd.f32 %v551_v39, %v535_v41 }
 0x10c   : > { %v553_v44 = vadd.f32 %v551_v39, %v541_v42 }
 0x10d   : > { %v554_v45 = vsub.f32 0.0, %v552_v43 }
 0x10e   : > { %v555_v46 = vsub.f32 0.0, %v553_v44 }
 0x10f   : > { %v556_v47 = vmul.f32 1.442695, %v554_v45 }
 0x110   : > { %v558_v48 = vmul.f32 1.442695, %v555_v46 }
 0x111   : > { %770 = vpow2.f32 %v556_v47 }
 0x112   : > { %772 = vpow2.f32 %v558_v48 }
 0x11b   : > { %v771_v49 = vpop.eup %770 }
 0x11c   : > { %v773_v50 = vpop.eup %772  ;;  %v560_v51 = vadd.f32 1.0, %v771_v49 }
 0x11d   : > { %v561_v52 = vadd.f32 1.0, %v773_v50 }
 0x11e   : > { %774 = vrcp.f32 %v560_v51 }
 0x11f   : > { %776 = vrcp.f32 %v561_v52 }
 0x128   : > { %v775_v53 = vpop.eup %774 }
 0x129   : > { %v777_v54 = vpop.eup %776  ;;  %v564_v55 = vadd.f32 1.0, %v775_v53 }
 0x12a   : > { %v565_v56 = vadd.f32 1.0, %v777_v54 }
 0x12c   : > { %v568_v57 = vcombine.low %v564_v55, %v565_v56 }
 0x12e   : > { %v570_v58 = vmul.f32 %v568_v57, %v973_v6 }
 0x130   : > { %571 = vst [vmem:[%s324_s21] sm:$0xff] %v570_v58 }
 0x131   : > { %791 = shalt.err (!%p788_p5)
}
 0x132   : > { %s792_s16 = scalar_lea.hbm %s990_s25, 128  ;;  %s796_s19 = scalar_lea.hbm %s1044_s7, 256 }
 0x133   : > { %p793_p6 = scmp.ne.s32.totalorder %s990_s25, %s792_s16  ;;  %p797_p10 = scmp.lt.u32.totalorder %s990_s25, %s1044_s7 }
 0x134   : > { %p798_p11 = scmp.lt.u32.totalorder %s796_s19, %s792_s16  ;;  %p800_p13 = scmp.lt.u32.totalorder %s792_s16, %s990_s25 }
 0x135   : > { %p794_p7 = pnand %p793_p6, %p944_p4 }
 0x136   : > { %p799_p12 = por %p798_p11, %p797_p10 }
 0x137   : > { %p795_p9 = pneg %p794_p7 }
 0x138   : > { %p801_p0 = por %p800_p13, %p799_p12 }
 0x13a   : > { %p802_p1 = pnand %p801_p0, %p795_p9 }
 0x13c   : > { %805 = shalt.err (!%p802_p1)
}
 0x13d   : > { %709 = dma.vmem_to_hbm [thread:$0]  (%p944_p4), %s992_s22, 128, %s990_s25, %s573_s6  }
 0x13e PF: > { %p715_p2 = scmp.ge.s32.totalorder %s856_s8, 2  ;;  %s601_s23 = sand.u32 1, %s836_s26  }
 0x13f   : > { %s602_s24 = scalar_lea.sflag [#allocation4], %s601_s23 }
 0x140   : > { %p712_p3 = pnand %p715_p2, %p951_p8 }
 0x142   : > { %831 = dma.done.wait (!%p712_p3), %s602_s24, 128  }
 0x143   : > { %833 = vsyncadd (!%p712_p3), %s602_s24, 4294967168  ;;  %s22_s8 = sadd.s32 1, %s856_s8   ;;  %s1047_s26 = smov %s840_s27 }
 0x144   : > { %p19_p5 = scmp.ge.s32.totalorder %s22_s8, 4   ;;  %s1048_s27 = smov %s844_s28 }
 0x145   : > { %s1049_s28 = smov %s957_s15  ;;  %s1050_s29 = smov %s852_s30 }
 0x146   : > { %s1051_s30 = smov %s1053_s10  ;;  %21 = sbr.rel (!%p19_p5) target bundleno = 7 (0x7), region = 86 }
 0x14d   :  { %607 = vsyncpa [#allocation4], 1 }
 0x14e   :  { %609 = vsyncpa [#allocation4 + $0x1], 1 }

</bundles_post_ra>
